<compile_context>
chip_gen: v7x
topology: tpu7x:2x2x1
jax: 0.10.0
libtpu: 0.0.40
codegen_flags: <defaults>
</compile_context>

<pallas_src>
import math
from functools import partial

import jax
import jax.numpy as jnp
from jax import lax
from jax.experimental import pallas as pl
from jax.experimental.pallas import tpu as pltpu


_INV_SQRT2 = 1.0 / math.sqrt(2.0)
_LN_EPS = 1e-5

# torchvision video normalization constants used by VideoEncoder.preprocess
_VIDEO_MEAN = (0.43216, 0.394666, 0.37645)
_VIDEO_STD = (0.22803, 0.22145, 0.216989)


# ---------------------------------------------------------------------------
# 1) VideoEncoder.preprocess numeric core:  y = (x / 255 - mean) / std
# ---------------------------------------------------------------------------
def _normalize_kernel(x_ref, scale_ref, shift_ref, o_ref):
    # scale/shift are (1, W*C) rows with the per-channel constants pre-tiled, so
    # the whole normalization folds into a single lane-wise multiply-add (VPU).
    o_ref[...] = x_ref[...].astype(jnp.float32) * scale_ref[...] + shift_ref[...]


@jax.jit
def video_preprocess(x):
    """[B, T, H, W, 3] pixel video (0..255) -> normalized float32 [B, 3, T, H, W].

    Matches VideoEncoder.preprocess for inputs that already have T == 2 and the
    target spatial size.
    """
    B, T, H, W, C = x.shape
    assert C == 3
    # TODO(synk): F.interpolate(size=[2, H, W]) and torchvision resize((224, 224))
    #             (bilinear resampling branches of preprocess) are not
    #             implemented as Pallas kernels.
    mean = jnp.asarray(_VIDEO_MEAN, jnp.float32)
    std = jnp.asarray(_VIDEO_STD, jnp.float32)
    scale = jnp.tile(1.0 / (255.0 * std), W).reshape(1, W * C)   # multiplied
    shift = jnp.tile(-mean / std, W).reshape(1, W * C)           # added

    x2 = x.reshape(B * T * H, W * C).astype(jnp.float32)
    y = pl.pallas_call(
        _normalize_kernel,
        out_shape=jax.ShapeDtypeStruct((B * T * H, W * C), jnp.float32),
    )(x2, scale, shift)
    y = y.reshape(B, T, H, W, C)
    return jnp.transpose(y, (0, 4, 1, 2, 3))        # b t h w c -> b c t h w


# TODO(synk): the S3D separable-3D-conv backbone (pretrained torchvision model,
#             fc replaced by Identity) is not translatable to a self-contained
#             Pallas kernel; only its 1024-d embedding interface is assumed by
#             the projection head below.


# ---------------------------------------------------------------------------
# 2) MUGEN projection head on the encoder embedding (previously-reviewed kernel)
#    embed1 = x @ W1^T ; embed2 = dropout(gelu(embed1) @ W2^T)
#    out    = LayerNorm(embed1 + embed2)
# ---------------------------------------------------------------------------
def _projection_kernel(x_ref, w1_ref, w2_ref, g_ref, b_ref, o_ref, *, gelu_approx):
    # x_ref:  (TM, d_in) row tile, native dtype (f32/bf16) -> straight to the MXU
    # w1_ref: (d_in, d_out), w2_ref: (d_out, d_out): resident, single-buffered
    # g_ref/b_ref: (1, d_out) f32 LayerNorm affine params
    x = x_ref[...]

    # linear1 -- native-dtype operands, f32 accumulation on the MXU
    e1 = jnp.dot(x, w1_ref[...], preferred_element_type=jnp.float32)

    if gelu_approx:
        # tanh GELU: transcendental routes to the EUP slot, overlaps MXU/VALU
        h = jax.nn.gelu(e1, approximate=True)
    else:
        # exact erf GELU (torch.nn.GELU default) for torch parity
        h = 0.5 * e1 * (1.0 + lax.erf(e1 * _INV_SQRT2))

    # linear2 (+ dropout == identity in eval mode)
    # TODO(synk): training-mode dropout would use pltpu.prng_random_bits masking.
    e2 = jnp.dot(h.astype(w2_ref.dtype), w2_ref[...],
                 preferred_element_type=jnp.float32)

    # residual + LayerNorm over the feature dim, all in f32
    s = e1 + e2
    mean = jnp.mean(s, axis=-1, keepdims=True)
    centered = s - mean
    var = jnp.mean(centered * centered, axis=-1, keepdims=True)
    normed = centered * lax.rsqrt(var + _LN_EPS)

    o_ref[...] = (normed * g_ref[...] + b_ref[...]).astype(o_ref.dtype)


def _round_up(v, m):
    return ((v + m - 1) // m) * m


def _pick_tile_m(n_rows, requested):
    """Row tile: as large as requested (MXU-friendly), a multiple of 8 sublanes,
    and -- when the row count allows -- at least 2 grid steps so the parallel
    row axis can be sharded across both TensorCores on v7x."""
    tm = min(requested, _round_up(n_rows, 8))
    if n_rows > 8 and pl.cdiv(n_rows, tm) < 2:
        tm = max(8, _round_up(pl.cdiv(n_rows, 2), 8))
    return tm


@partial(jax.jit, static_argnames=("tile_m", "gelu_approx"))
def projection_forward(x, w1, w2, gamma, beta, *, tile_m=256, gelu_approx=True):
    """x: [..., d_in] -> [..., d_out].  w1: [d_in, d_out], w2: [d_out, d_out]
    (weights stored pre-transposed vs the PyTorch nn.Linear convention)."""
    d_in = x.shape[-1]
    d_out = w1.shape[1]
    lead = x.shape[:-1]

    x2 = x.reshape(-1, d_in)
    n = x2.shape[0]

    tm = _pick_tile_m(n, tile_m)
    # Ragged tail handled by Pallas edge masking -- no wrapper-side jnp.pad
    # (which would cost an extra HBM read+write of the activations).
    grid = (pl.cdiv(n, tm),)

    # LayerNorm params cast once, wrapper-side (tiny), kept f32 in-kernel.
    g2 = gamma.astype(jnp.float32).reshape(1, d_out)
    b2 = beta.astype(jnp.float32).reshape(1, d_out)

    # Constant operands (index_map == (0, 0)) are single-buffered: no point
    # paying 2x VMEM for data that is never re-fetched across grid steps.
    const = dict(pipeline_mode=pl.Buffered(1))
    in_specs = [
        pl.BlockSpec((tm, d_in), lambda i: (i, 0)),
        pl.BlockSpec((d_in, d_out), lambda i: (0, 0), **const),
        pl.BlockSpec((d_out, d_out), lambda i: (0, 0), **const),
        pl.BlockSpec((1, d_out), lambda i: (0, 0), **const),
        pl.BlockSpec((1, d_out), lambda i: (0, 0), **const),
    ]
    # TODO(synk): for very large d_out (when ~2*d_out^2 resident-weight bytes no
    #             longer fit v7x's 64 MiB VMEM), add an output-column grid axis
    #             tiling w1/w2 as (d_in, tn)/(d_out, tn), tn a multiple of 128.

    out = pl.pallas_call(
        partial(_projection_kernel, gelu_approx=gelu_approx),
        out_shape=jax.ShapeDtypeStruct((n, d_out), x.dtype),
        grid_spec=pltpu.PrefetchScalarGridSpec(
            num_scalar_prefetch=0,
            grid=grid,
            in_specs=in_specs,
            out_specs=pl.BlockSpec((tm, d_out), lambda i: (i, 0)),
        ),
        compiler_params=pltpu.CompilerParams(
            dimension_semantics=("parallel",),
            vmem_limit_bytes=32 * 1024 * 1024,
        ),
    )(x2, w1, w2, g2, b2)

    return out.reshape(*lead, d_out)


def _projection_reference(x, w1, w2, gamma, beta, *, gelu_approx):
    e1 = x @ w1
    if gelu_approx:
        h = jax.nn.gelu(e1, approximate=True)
    else:
        h = 0.5 * e1 * (1.0 + lax.erf(e1 * _INV_SQRT2))
    e2 = h @ w2
    s = e1 + e2
    mean = jnp.mean(s, axis=-1, keepdims=True)
    var = jnp.mean((s - mean) ** 2, axis=-1, keepdims=True)
    return (s - mean) * lax.rsqrt(var + _LN_EPS) * gamma + beta


if __name__ == "__main__":
    key = jax.random.PRNGKey(0)
    k_v, k_f, k_w1, k_w2 = jax.random.split(key, 4)

    # ---- VideoEncoder.preprocess normalization (Pallas) ----
    B, T, H, W, C = 2, 2, 16, 16, 3          # T already 2 -> no temporal resample
    video = jax.random.randint(k_v, (B, T, H, W, C), 0, 256).astype(jnp.float32)
    pre = jax.block_until_ready(video_preprocess(video))
    mean = jnp.asarray(_VIDEO_MEAN, jnp.float32)
    std = jnp.asarray(_VIDEO_STD, jnp.float32)
    pre_ref = jnp.transpose((video / 255.0 - mean) / std, (0, 4, 1, 2, 3))
    assert pre.shape == (B, C, T, H, W), pre.shape
    assert jnp.allclose(pre, pre_ref, atol=1e-5, rtol=1e-5), \
        float(jnp.max(jnp.abs(pre - pre_ref)))

    # ---- projection head on encoder-style 1024-d embeddings (Pallas) ----
    # d_in = 1024 = S3D fc in_channels (VideoEncoder.embedding_dim); 40 rows
    # gives a ragged last tile to exercise the no-pad edge-masking path.
    n_rows, d_in, d_out = 40, 1024, 256
    feats = jax.random.normal(k_f, (n_rows, d_in), dtype=jnp.float32)

    bound1 = 1.0 / math.sqrt(d_in)
    bound2 = 1.0 / math.sqrt(d_out)
    w1 = jax.random.uniform(k_w1, (d_in, d_out), jnp.float32, -bound1, bound1)
    w2 = jax.random.uniform(k_w2, (d_out, d_out), jnp.float32, -bound2, bound2)
    gamma = jnp.ones((d_out,), jnp.float32)
    beta = jnp.zeros((d_out,), jnp.float32)

    for approx in (False, True):             # erf (torch parity) and tanh (EUP)
        out = jax.block_until_ready(
            projection_forward(feats, w1, w2, gamma, beta, gelu_approx=approx))
        ref = _projection_reference(feats, w1, w2, gamma, beta, gelu_approx=approx)
        assert out.shape == (n_rows, d_out), out.shape
        assert jnp.allclose(out, ref, atol=2e-3, rtol=2e-3), \
            float(jnp.max(jnp.abs(out - ref)))

    print("KERNEL_OK")
</pallas_src>

<mosaic_0001>
module attributes {stable_mosaic.version = 11 : i64} {
  func.func @_normalize_kernel(%arg0: memref<64x48xf32, #tpu.memory_space<vmem>>, %arg1: memref<1x48xf32, #tpu.memory_space<vmem>>, %arg2: memref<1x48xf32, #tpu.memory_space<vmem>>, %arg3: memref<64x48xf32, #tpu.memory_space<vmem>>) attributes {dimension_semantics = [], scalar_prefetch = 0 : i64, scratch_operands = 0 : i64, tpu.core_type = #tpu.core_type<tc>} {
    %c0 = arith.constant 0 : index
    %c0_0 = arith.constant 0 : index
    %0 = vector.load %arg0[%c0, %c0_0] : memref<64x48xf32, #tpu.memory_space<vmem>>, vector<64x48xf32>
    %c0_1 = arith.constant 0 : index
    %c0_2 = arith.constant 0 : index
    %1 = vector.load %arg1[%c0_1, %c0_2] : memref<1x48xf32, #tpu.memory_space<vmem>>, vector<1x48xf32>
    %2 = vector.broadcast %1 : vector<1x48xf32> to vector<64x48xf32>
    %3 = arith.mulf %0, %2 : vector<64x48xf32>
    %c0_3 = arith.constant 0 : index
    %c0_4 = arith.constant 0 : index
    %4 = vector.load %arg2[%c0_3, %c0_4] : memref<1x48xf32, #tpu.memory_space<vmem>>, vector<1x48xf32>
    %5 = vector.broadcast %4 : vector<1x48xf32> to vector<64x48xf32>
    %6 = arith.addf %3, %5 : vector<64x48xf32>
    %c0_5 = arith.constant 0 : index
    %c0_6 = arith.constant 0 : index
    %7 = vector.load %arg3[%c0_5, %c0_6] : memref<64x48xf32, #tpu.memory_space<vmem>>, vector<64x48xf32>
    tpu.vector_store %arg3[%c0_5, %c0_6], %6 {strides = array<i32>} : memref<64x48xf32, #tpu.memory_space<vmem>>, vector<64x48xf32>,
    return
  }
}

</mosaic_0001>

<bundles_post_ra>
// kernel: tile.10
= control target key start
LH: loop header
LB: loop body
LE: loop exit
PB: predicated region body
PF: predicated region fallthrough
CT: control target
= control target key end

     0   :  { %s28_s0 = inlined_call_operand.vmem [shape: f32[3], index: 0, kind: input, shape index: {}]   ;;  %s29_s1 = inlined_call_operand.vmem [shape: f32[16,3], index: 1, kind: output, shape index: {}]  }
   0x1   :  { %v4_v0 = vld [vmem:[%s28_s0] ss:$0 sm:$0xff] }
   0x2   :  { %5 = vst [vmem:[%s29_s1] sm:$0xff] %v4_v0  ;;  %8 = vst [vmem:[%s29_s1 + $0x8] sm:$0xff] %v4_v0 }

// kernel: tile.11
= control target key start
LH: loop header
LB: loop body
LE: loop exit
PB: predicated region body
PF: predicated region fallthrough
CT: control target
= control target key end

     0   :  { %s131_s10 = smov 45   ;;  %s132_s11 = smov 39   ;;  %vm3_vm0 = vcmask 23552   ;;  %vm9_vm1 = vcmask 392552   ;;  %vm15_vm2 = vcmask 367952   ;;  %vm21_vm3 = vcmask 343352   ;;  %s207_s0 = inlined_call_operand.vmem [shape: f32[16,3], index: 0, kind: input, shape index: {}]   ;;  %s208_s1 = inlined_call_operand.vmem [shape: f32[1,48], index: 1, kind: output, shape index: {}]  }
   0x1   :  { %v101_v0 = vld [vmem:[%s207_s0 + $0xf] sm:$0x1]   ;;  %v103_v1 = vld [vmem:[%s207_s0 + $0xd] sm:$0x1]   ;;  %v102_v2 = vld [vmem:[%s207_s0 + $0xe] sm:$0x1]  }
   0x2   :  { %7 = vrot.lane.b32.xlu0 %v101_v0, %s131_s10  ;;  %19 = vrot.lane.b32.xlu1 %v103_v1, %s132_s11  ;;  %v104_v3 = vld [vmem:[%s207_s0 + $0xc] sm:$0x1]   ;;  %s133_s16 = smov 42   ;;  %s134_s17 = smov 36   ;;  %v105_v4 = vld [vmem:[%s207_s0 + $0xb] sm:$0x1]  }
   0x3   :  { %v106_v5 = vld [vmem:[%s207_s0 + $0xa] sm:$0x1]   ;;  %v2_v6 = vld [vmem:[%s207_s0] sm:$0x1]   ;;  %s135_s24 = smov 33   ;;  %s136_s25 = smov 30  }
   0x4   :  { %4 = vst.msk [vmem:[#allocation0] sm:$0x1] %vm3_vm0, %v2_v6   ;;  %v107_v7 = vld [vmem:[%s207_s0 + $0x9] sm:$0x1]   ;;  %v108_v8 = vld [vmem:[%s207_s0 + $0x8] sm:$0x1]  }
   0x5   :  { %s137_s30 = smov 27   ;;  %s138_s2 = smov 24   ;;  %v109_v9 = vld [vmem:[%s207_s0 + $0x7] sm:$0x1]   ;;  %v110_v10 = vld [vmem:[%s207_s0 + $0x6] sm:$0x1]  }
   0x6   :  { %13 = vrot.lane.b32.xlu0 %v102_v2, %s133_s16  ;;  %25 = vrot.lane.b32.xlu1 %v104_v3, %s134_s17  ;;  %s139_s7 = smov 21   ;;  %s140_s8 = smov 18   ;;  %v111_v11 = vld [vmem:[%s207_s0 + $0x5] sm:$0x1]   ;;  %v112_v12 = vld [vmem:[%s207_s0 + $0x4] sm:$0x1]  }
   0x7   :  { %s141_s13 = smov 15   ;;  %s142_s14 = smov 12   ;;  %v113_v13 = vld [vmem:[%s207_s0 + $0x3] sm:$0x1]   ;;  %v114_v14 = vld [vmem:[%s207_s0 + $0x2] sm:$0x1]  }
   0x8   :  { %s143_s19 = smov 9   ;;  %s144_s20 = smov 6   ;;  %v115_v15 = vld [vmem:[%s207_s0 + $0x1] sm:$0x1]   ;;  %vm27_vm4 = vcmask 318752   ;;  %vm33_vm5 = vcmask 294152  }
   0x9   :  { %s145_s0 = smov 3   ;;  %vm39_vm6 = vcmask 269552   ;;  %vm45_vm7 = vcmask 244952   ;;  %vm51_vm8 = vcmask 220352   ;;  %vm57_vm9 = vcmask 195752  }
   0xa   :  { %31 = vrot.lane.b32.xlu0 %v105_v4, %s135_s24  ;;  %37 = vrot.lane.b32.xlu1 %v106_v5, %s136_s25  ;;  %vm63_vm10 = vcmask 171152   ;;  %vm69_vm11 = vcmask 146552   ;;  %vm75_vm12 = vcmask 121952   ;;  %vm81_vm13 = vcmask 97352  }
   0xb   :  { %vm87_vm14 = vcmask 72752   ;;  %vm93_vm15 = vcmask 48152  }
   0xe   :  { %43 = vrot.lane.b32.xlu0 %v107_v7, %s137_s30  ;;  %49 = vrot.lane.b32.xlu1 %v108_v8, %s138_s2 }
  0x12   :  { %55 = vrot.lane.b32.xlu0 %v109_v9, %s139_s7  ;;  %61 = vrot.lane.b32.xlu1 %v110_v10, %s140_s8 }
  0x16   :  { %67 = vrot.lane.b32.xlu0 %v111_v11, %s141_s13  ;;  %73 = vrot.lane.b32.xlu1 %v112_v12, %s142_s14 }
  0x1a   :  { %79 = vrot.lane.b32.xlu0 %v113_v13, %s143_s19  ;;  %85 = vrot.lane.b32.xlu1 %v114_v14, %s144_s20 }
  0x1e   :  { %91 = vrot.lane.b32.xlu0 %v115_v15, %s145_s0 }
  0x74   :  { %v8_v16 = vpop.permute.xlu0 %7   ;;  %v20_v17 = vpop.permute.xlu1 %19  }
  0x75   :  { %10 = vst.msk [vmem:[#allocation0] sm:$0x1] %vm9_vm1, %v8_v16  }
  0x78   :  { %v14_v18 = vpop.permute.xlu0 %13   ;;  %v26_v19 = vpop.permute.xlu1 %25  }
  0x79   :  { %16 = vst.msk [vmem:[#allocation0] sm:$0x1] %vm15_vm2, %v14_v18  }
  0x7a   :  { %22 = vst.msk [vmem:[#allocation0] sm:$0x1] %vm21_vm3, %v20_v17  }
  0x7b   :  { %28 = vst.msk [vmem:[#allocation0] sm:$0x1] %vm27_vm4, %v26_v19  }
  0x7c   :  { %v32_v20 = vpop.permute.xlu0 %31   ;;  %v38_v21 = vpop.permute.xlu1 %37  }
  0x7d   :  { %34 = vst.msk [vmem:[#allocation0] sm:$0x1] %vm33_vm5, %v32_v20  }
  0x7e   :  { %40 = vst.msk [vmem:[#allocation0] sm:$0x1] %vm39_vm6, %v38_v21  }
  0x80   :  { %v44_v22 = vpop.permute.xlu0 %43   ;;  %v50_v23 = vpop.permute.xlu1 %49  }
  0x81   :  { %46 = vst.msk [vmem:[#allocation0] sm:$0x1] %vm45_vm7, %v44_v22  }
  0x82   :  { %52 = vst.msk [vmem:[#allocation0] sm:$0x1] %vm51_vm8, %v50_v23  }
  0x84   :  { %v56_v24 = vpop.permute.xlu0 %55   ;;  %v62_v25 = vpop.permute.xlu1 %61  }
  0x85   :  { %58 = vst.msk [vmem:[#allocation0] sm:$0x1] %vm57_vm9, %v56_v24  }
  0x86   :  { %64 = vst.msk [vmem:[#allocation0] sm:$0x1] %vm63_vm10, %v62_v25  }
  0x88   :  { %v68_v26 = vpop.permute.xlu0 %67   ;;  %v74_v27 = vpop.permute.xlu1 %73  }
  0x89   :  { %70 = vst.msk [vmem:[#allocation0] sm:$0x1] %vm69_vm11, %v68_v26  }
  0x8a   :  { %76 = vst.msk [vmem:[#allocation0] sm:$0x1] %vm75_vm12, %v74_v27  }
  0x8c   :  { %v80_v28 = vpop.permute.xlu0 %79   ;;  %v86_v29 = vpop.permute.xlu1 %85  }
  0x8d   :  { %82 = vst.msk [vmem:[#allocation0] sm:$0x1] %vm81_vm13, %v80_v28  }
  0x8e   :  { %88 = vst.msk [vmem:[#allocation0] sm:$0x1] %vm87_vm14, %v86_v29  }
  0x90   :  { %v92_v30 = vpop.permute.xlu0 %91  }
  0x91   :  { %94 = vst.msk [vmem:[#allocation0] sm:$0x1] %vm93_vm15, %v92_v30  }
  0x98   :  { %v98_v31 = vld [vmem:[#allocation0] sm:$0x1] }
  0x99   :  { %100 = vst [vmem:[%s208_s1] sm:$0x1] %v98_v31 }

// kernel: video_preprocess.1
= control target key start
LH: loop header
LB: loop body
LE: loop exit
PB: predicated region body
PF: predicated region fallthrough
CT: control target
= control target key end

     0   :  { %vm52_vm0 = vcmask 392192   ;;  %s149_s0 = inlined_call_operand.vmem [shape: f32[64,48], index: 0, kind: input, shape index: {}]   ;;  %s150_s1 = inlined_call_operand.vmem [shape: f32[1,48], index: 1, kind: input, shape index: {}]   ;;  %s151_s2 = inlined_call_operand.vmem [shape: f32[1,48], index: 2, kind: input, shape index: {}]   ;;  %s152_s3 = inlined_call_operand.vmem [shape: f32[64,48], index: 3, kind: output, shape index: {}]  }
   0x1   :  { %v14_v0 = vld [vmem:[%s149_s0] sm:$0xff]  ;;  %v15_v4 = vld [vmem:[%s149_s0 + $0x8] sm:$0xff]  ;;  %v16_v5 = vld [vmem:[%s149_s0 + $0x10] sm:$0xff] }
   0x2   :  { %v65_v1 = vld [vmem:[%s150_s1] ss:$0 sm:$0xff]  ;;  %v17_v6 = vld [vmem:[%s149_s0 + $0x18] sm:$0xff]  ;;  %v19_v11 = vld [vmem:[%s149_s0 + $0x28] sm:$0xff] }
   0x3   :  { %v66_v2 = vld [vmem:[%s151_s2] ss:$0 sm:$0xff]  ;;  %v29_v3 = vmul.f32 %v65_v1, %v14_v0  ;;  %v30_v7 = vmul.f32 %v65_v1, %v15_v4  ;;  %v31_v8 = vmul.f32 %v65_v1, %v16_v5  ;;  %v32_v9 = vmul.f32 %v65_v1, %v17_v6  ;;  %v20_v12 = vld [vmem:[%s149_s0 + $0x30] sm:$0xff]  ;;  %v21_v17 = vld [vmem:[%s149_s0 + $0x38] sm:$0xff] }
   0x4   :  { %v18_v10 = vld [vmem:[%s149_s0 + $0x20] sm:$0xff]  ;;  %v34_v15 = vmul.f32 %v65_v1, %v19_v11  ;;  %v35_v16 = vmul.f32 %v65_v1, %v20_v12  ;;  %v36_v21 = vmul.f32 %v65_v1, %v21_v17 }
   0x5   :  { %v44_v13 = vadd.f32 %v66_v2, %v29_v3  ;;  %v33_v14 = vmul.f32 %v65_v1, %v18_v10  ;;  %v45_v18 = vadd.f32 %v66_v2, %v30_v7  ;;  %v46_v19 = vadd.f32 %v66_v2, %v31_v8 }
   0x6   :  { %v47_v20 = vadd.f32 %v66_v2, %v32_v9  ;;  %v49_v23 = vadd.f32 %v66_v2, %v34_v15  ;;  %v50_v24 = vadd.f32 %v66_v2, %v35_v16  ;;  %v51_v25 = vadd.f32 %v66_v2, %v36_v21 }
   0x7   :  { %53 = vst.msk [vmem:[%s152_s3] sm:$0xff] %vm52_vm0, %v44_v13  ;;  %v48_v22 = vadd.f32 %v66_v2, %v33_v14  ;;  %54 = vst.msk [vmem:[%s152_s3 + $0x8] sm:$0xff] %vm52_vm0, %v45_v18 }
   0x8   :  { %55 = vst.msk [vmem:[%s152_s3 + $0x10] sm:$0xff] %vm52_vm0, %v46_v19  ;;  %56 = vst.msk [vmem:[%s152_s3 + $0x18] sm:$0xff] %vm52_vm0, %v47_v20 }
   0x9   :  { %57 = vst.msk [vmem:[%s152_s3 + $0x20] sm:$0xff] %vm52_vm0, %v48_v22  ;;  %58 = vst.msk [vmem:[%s152_s3 + $0x28] sm:$0xff] %vm52_vm0, %v49_v23 }
   0xa   :  { %59 = vst.msk [vmem:[%s152_s3 + $0x30] sm:$0xff] %vm52_vm0, %v50_v24  ;;  %60 = vst.msk [vmem:[%s152_s3 + $0x38] sm:$0xff] %vm52_vm0, %v51_v25 }

</bundles_post_ra>
